<compile_context>
chip_gen: v5e
topology: v5e:2x2
jax: 0.10.0
libtpu: 0.0.40
codegen_flags: <defaults>
</compile_context>

<pallas_src>
import functools

import jax
import jax.numpy as jnp
import numpy as np
from jax import lax
from jax.experimental import pallas as pl
from jax.experimental.pallas import tpu as pltpu

GATES = 4  # (i, f, o, g)


# ----------------------------- Pallas kernel --------------------------------
def _lstm_chunk_kernel(pre_x_ref, zh_ref, u_ref, h0_ref, c0_ref,
                       out_ref, hn_ref, cn_ref,
                       h_scr, c_scr, *, t_chunk):
    """One time-chunk of the recurrence; h/c carried in VMEM scratch across chunks.

    pre_x_ref : (T_CHUNK, B, 4H) f32  -- (x[t]*zx[g]) @ Wx[g] + b[g], gate-major lanes
    zh_ref    : (B, 4H)  f32          -- hidden dropout masks, gate-major lanes
    u_ref     : (4H, 4H) f32          -- block-diagonal stacked recurrent weights
    h0_ref / c0_ref : (B, H)          -- initial state (consumed only on chunk 0)
    out_ref   : (T_CHUNK, B, H)       -- h_t for every step of this chunk
    hn_ref / cn_ref : (B, H)          -- final state (written only on last chunk)
    """
    B = hn_ref.shape[0]
    H = hn_ref.shape[-1]

    @pl.when(pl.program_id(0) == 0)
    def _init():
        h_scr[...] = h0_ref[...].astype(jnp.float32)
        c_scr[...] = c0_ref[...].astype(jnp.float32)

    zh = zh_ref[...]       # (B, 4H) f32, loaded once per chunk
    u_bd = u_ref[...]      # (4H, 4H) f32, loaded once per chunk

    def step(t, carry):
        h, c = carry                                          # (B, H) f32 each
        # gate-major lane-dense replication of h -> one (B,4H)@(4H,4H) MXU matmul
        h_rep = jnp.concatenate([h, h, h, h], axis=-1)        # (B, 4H)
        pre = pre_x_ref[t] + jnp.dot(h_rep * zh, u_bd,
                                     preferred_element_type=jnp.float32)
        # two full-width EUP calls instead of four quarter-lane ones
        sig = jax.nn.sigmoid(pre)                             # (B, 4H)
        th = jnp.tanh(pre)                                    # (B, 4H)
        i = sig[:, 0 * H:1 * H]
        f = sig[:, 1 * H:2 * H]
        o = sig[:, 2 * H:3 * H]
        g = th[:, 3 * H:4 * H]
        c_new = f * c + i * g
        h_new = o * jnp.tanh(c_new)
        out_ref[t] = h_new.astype(out_ref.dtype)
        return h_new, c_new

    h_fin, c_fin = lax.fori_loop(0, t_chunk, step,
                                 (h_scr[...], c_scr[...]),
                                 unroll=min(t_chunk, 8))
    h_scr[...] = h_fin
    c_scr[...] = c_fin

    @pl.when(pl.program_id(0) == pl.num_programs(0) - 1)
    def _finalize():
        hn_ref[...] = h_fin.astype(hn_ref.dtype)
        cn_ref[...] = c_fin.astype(cn_ref.dtype)


# ------------------------------ host wrapper ---------------------------------
def _block_diag(mats):
    """(G, R, C) -> (G*R, G*C) block-diagonal."""
    g, r, c = mats.shape
    out = jnp.zeros((g * r, g * c), mats.dtype)
    for k in range(g):
        out = out.at[k * r:(k + 1) * r, k * c:(k + 1) * c].set(mats[k])
    return out


def _pick_chunk(T, target):
    """Largest divisor of T that is <= target (keeps the grid exact, no masking)."""
    # TODO(synk): for long, non-divisible T prefer masking the tail steps instead
    # of degrading the chunk size.
    for c in range(min(T, target), 0, -1):
        if T % c == 0:
            return c
    return 1


def run_cell(x, zx, zh, Wx, Uh, b, h0, c0, *, t_chunk_target=8):
    """One StochasticLSTMCell forward over the full sequence (time-major x)."""
    T, B, I = x.shape
    G, _, H = Uh.shape
    assert G == GATES

    # ---- pad batch to a multiple of 8 sublanes (full f32 vreg rows)
    Bp = max(8, ((B + 7) // 8) * 8)
    pad_b = Bp - B
    if pad_b:
        x = jnp.pad(x, ((0, 0), (0, pad_b), (0, 0)))
        zx = jnp.pad(zx, ((0, 0), (0, pad_b), (0, 0)))
        zh = jnp.pad(zh, ((0, 0), (0, pad_b), (0, 0)))
        h0 = jnp.pad(h0, ((0, pad_b), (0, 0)))
        c0 = jnp.pad(c0, ((0, pad_b), (0, 0)))

    hp = lax.Precision.HIGHEST

    # ---- non-recurrent input path: ONE packed matmul for all T (off the serial
    #      critical path). lhs gate-major (T*Bp, 4I), rhs block-diag(Wx) (4I, 4H).
    xg = x[:, None, :, :] * zx[None, :, :, :]                       # (T, G, Bp, I)
    lhs = jnp.transpose(xg, (0, 2, 1, 3)).reshape(T * Bp, G * I)    # (T*Bp, 4I)
    wx_bd = _block_diag(Wx.astype(jnp.float32))                     # (4I, 4H)
    pre_x = jnp.dot(lhs.astype(jnp.float32), wx_bd,
                    preferred_element_type=jnp.float32, precision=hp)
    pre_x = pre_x.reshape(T, Bp, G * H) + b.reshape(1, 1, G * H)    # (T, Bp, 4H)

    # hidden dropout masks, gate-major lane layout (Bp, 4H)
    zh_flat = jnp.transpose(zh, (1, 0, 2)).reshape(Bp, G * H).astype(jnp.float32)

    # block-diagonal stacked recurrent weights (4H, 4H)
    u_bd = _block_diag(Uh.astype(jnp.float32))

    t_chunk = _pick_chunk(T, t_chunk_target)
    n_chunks = T // t_chunk

    # explicit VMEM budget (double-buffered pipelined chunks + resident operands)
    f32b = 4
    vmem_est = (2 * t_chunk * Bp * G * H * f32b            # pre_x chunk x2
                + 2 * t_chunk * Bp * H * f32b               # out chunk x2
                + 2 * (Bp * G * H) * f32b                   # zh
                + 2 * (G * H) * (G * H) * f32b              # U_bd
                + 2 * 4 * Bp * H * f32b                     # h0/c0/hn/cn
                + 2 * Bp * H * f32b)                        # scratch
    vmem_limit = int(min(max(2 * vmem_est, 8 << 20), 64 << 20))

    out_shapes = (
        jax.ShapeDtypeStruct((T, Bp, H), x.dtype),   # h_t for all steps
        jax.ShapeDtypeStruct((Bp, H), x.dtype),      # final h
        jax.ShapeDtypeStruct((Bp, H), x.dtype),      # final c
    )

    kernel = functools.partial(_lstm_chunk_kernel, t_chunk=t_chunk)
    out, hn, cn = pl.pallas_call(
        kernel,
        out_shape=out_shapes,
        grid=(n_chunks,),
        in_specs=[
            pl.BlockSpec((t_chunk, Bp, G * H), lambda s: (s, 0, 0)),   # pre_x chunk
            pl.BlockSpec((Bp, G * H), lambda s: (0, 0)),               # zh
            pl.BlockSpec((G * H, G * H), lambda s: (0, 0)),            # U_bd
            pl.BlockSpec((Bp, H), lambda s: (0, 0)),                   # h0
            pl.BlockSpec((Bp, H), lambda s: (0, 0)),                   # c0
        ],
        out_specs=(
            pl.BlockSpec((t_chunk, Bp, H), lambda s: (s, 0, 0)),       # out chunk
            pl.BlockSpec((Bp, H), lambda s: (0, 0)),                   # hn
            pl.BlockSpec((Bp, H), lambda s: (0, 0)),                   # cn
        ),
        scratch_shapes=[pltpu.VMEM((Bp, H), jnp.float32),              # h carry
                        pltpu.VMEM((Bp, H), jnp.float32)],             # c carry
        compiler_params=pltpu.CompilerParams(
            dimension_semantics=("arbitrary",),
            vmem_limit_bytes=vmem_limit),
    )(pre_x, zh_flat, u_bd, h0, c0)

    return out[:, :B, :], hn[:B], cn[:B]


# ------------------------- parameter / mask setup (glue) --------------------
def init_cell_params(key, input_size, hidden_size):
    k = 1.0 / np.sqrt(hidden_size)
    keys = jax.random.split(key, 17)

    def u(kk, shape):
        return jax.random.uniform(kk, shape, jnp.float32, minval=-k, maxval=k)

    # PyTorch Linear weight is (out, in); stored here transposed as (in, out).
    Wx = jnp.stack([u(keys[i], (input_size, hidden_size)) for i in range(4)])       # Wi,Wf,Wo,Wg
    bW = jnp.stack([u(keys[4 + i], (hidden_size,)) for i in range(4)])
    Uh = jnp.stack([u(keys[8 + i], (hidden_size, hidden_size)) for i in range(4)])  # Ui,Uf,Uo,Ug
    bU = jnp.stack([u(keys[12 + i], (hidden_size,)) for i in range(4)])
    p_logit = jax.random.normal(keys[16], ())   # dropout=None path: p = sigmoid(p_logit)
    return dict(Wx=Wx, Uh=Uh, b=bW + bU, p_logit=p_logit)


def sample_masks(key, p, B, input_size, hidden_size):
    """Concrete-dropout relaxed masks, scaled by 1/(1-p) (mirrors _sample_mask)."""
    eps = 1e-7
    temp = 0.1
    kx, kh = jax.random.split(key)
    ux = jax.random.uniform(kx, (GATES, B, input_size), dtype=jnp.float32)
    uh = jax.random.uniform(kh, (GATES, B, hidden_size), dtype=jnp.float32)
    if input_size == 1:
        zx = 1.0 - jax.nn.sigmoid(
            (jnp.log(eps) - jnp.log(1.0 + eps)
             + jnp.log(ux + eps) - jnp.log(1.0 - ux + eps)) / temp)
    else:
        zx = (1.0 - jax.nn.sigmoid(
            (jnp.log(p + eps) - jnp.log(1.0 - p + eps)
             + jnp.log(ux + eps) - jnp.log(1.0 - ux + eps)) / temp)) / (1.0 - p)
    zh = (1.0 - jax.nn.sigmoid(
        (jnp.log(p + eps) - jnp.log(1.0 - p + eps)
         + jnp.log(uh + eps) - jnp.log(1.0 - uh + eps)) / temp)) / (1.0 - p)
    return zx, zh


def stochastic_lstm_cell_forward(x, params, mask_key, hx=None, *, t_chunk_target=8):
    """StochasticLSTMCell.forward: returns (outputs, (h_n, c_n))."""
    T, B, _ = x.shape
    H = params["Uh"].shape[-1]
    if hx is None:
        h0 = jnp.zeros((B, H), x.dtype)
        c0 = jnp.zeros((B, H), x.dtype)
    else:
        h0, c0 = hx
    p = jax.nn.sigmoid(params["p_logit"])
    zx, zh = sample_masks(mask_key, p, B, x.shape[-1], H)
    out, hn, cn = run_cell(x, zx, zh, params["Wx"], params["Uh"], params["b"],
                           h0, c0, t_chunk_target=t_chunk_target)
    return out, (hn, cn)


# ------------------------------ pure-JAX reference ---------------------------
def _ref_cell(x, zx, zh, Wx, Uh, b, h0, c0):
    T = x.shape[0]
    h, c = h0, c0
    hp = lax.Precision.HIGHEST
    outs = []
    for t in range(T):
        pre = [jnp.dot(x[t] * zx[g], Wx[g], precision=hp,
                       preferred_element_type=jnp.float32)
               + jnp.dot(h * zh[g], Uh[g], precision=hp,
                         preferred_element_type=jnp.float32)
               + b[g]
               for g in range(4)]
        i = jax.nn.sigmoid(pre[0]); f = jax.nn.sigmoid(pre[1])
        o = jax.nn.sigmoid(pre[2]); g = jnp.tanh(pre[3])
        c = f * c + i * g
        h = o * jnp.tanh(c)
        outs.append(h)
    return jnp.stack(outs), (h, c)


# ----------------------------------- main ------------------------------------
if __name__ == "__main__":
    T, B = 8, 2
    input_size, hidden_size = 4, 32

    root = jax.random.PRNGKey(0)
    k_x, k_mask, k_param = jax.random.split(root, 3)

    x = jax.random.normal(k_x, (T, B, input_size), dtype=jnp.float32)
    params = init_cell_params(k_param, input_size, hidden_size)

    # t_chunk_target=4 -> grid=(2,) so the chunked h/c carry path is exercised.
    fwd = jax.jit(functools.partial(stochastic_lstm_cell_forward, t_chunk_target=4))
    outputs, (h_n, c_n) = fwd(x, params, k_mask)
    outputs, h_n, c_n = jax.block_until_ready((outputs, h_n, c_n))

    assert outputs.shape == (T, B, hidden_size)
    assert h_n.shape == (B, hidden_size)
    assert c_n.shape == (B, hidden_size)

    # Reference: exact module semantics (same sampled masks, f32 math).
    p = jax.nn.sigmoid(params["p_logit"])
    zx, zh = sample_masks(k_mask, p, B, input_size, hidden_size)
    ref_out, (ref_h, ref_c) = _ref_cell(
        x, zx, zh, params["Wx"], params["Uh"], params["b"],
        jnp.zeros((B, hidden_size), x.dtype), jnp.zeros((B, hidden_size), x.dtype))

    np.testing.assert_allclose(np.asarray(outputs), np.asarray(ref_out),
                               rtol=2e-3, atol=2e-3)
    np.testing.assert_allclose(np.asarray(h_n), np.asarray(ref_h),
                               rtol=2e-3, atol=2e-3)
    np.testing.assert_allclose(np.asarray(c_n), np.asarray(ref_c),
                               rtol=2e-3, atol=2e-3)

    print("KERNEL_OK")
</pallas_src>

<mosaic_0001>
module attributes {stable_mosaic.version = 11 : i64} {
  func.func @_lstm_chunk_kernel(%arg0: i32, %arg1: memref<4x8x128xf32, #tpu.memory_space<vmem>>, %arg2: memref<8x128xf32, #tpu.memory_space<vmem>>, %arg3: memref<128x128xf32, #tpu.memory_space<vmem>>, %arg4: memref<8x32xf32, #tpu.memory_space<vmem>>, %arg5: memref<8x32xf32, #tpu.memory_space<vmem>>, %arg6: memref<4x8x32xf32, #tpu.memory_space<vmem>>, %arg7: memref<8x32xf32, #tpu.memory_space<vmem>>, %arg8: memref<8x32xf32, #tpu.memory_space<vmem>>, %arg9: memref<8x32xf32, #tpu.memory_space<vmem>>, %arg10: memref<8x32xf32, #tpu.memory_space<vmem>>) attributes {dimension_semantics = [#tpu.dimension_semantics<arbitrary>], iteration_bounds = array<i64: 2>, scalar_prefetch = 0 : i64, scratch_operands = 2 : i64, tpu.core_type = #tpu.core_type<tc>, window_params = [{transform_indices = @transform_0, window_bounds = array<i64: 4, 8, 128>}, {pipeline_mode = #tpu.pipeline_mode<synchronous>, transform_indices = @transform_1, window_bounds = array<i64: 8, 128>}, {pipeline_mode = #tpu.pipeline_mode<synchronous>, transform_indices = @transform_2, window_bounds = array<i64: 128, 128>}, {pipeline_mode = #tpu.pipeline_mode<synchronous>, transform_indices = @transform_3, window_bounds = array<i64: 8, 32>}, {pipeline_mode = #tpu.pipeline_mode<synchronous>, transform_indices = @transform_4, window_bounds = array<i64: 8, 32>}, {transform_indices = @transform_5, window_bounds = array<i64: 4, 8, 32>}, {pipeline_mode = #tpu.pipeline_mode<synchronous>, transform_indices = @transform_6, window_bounds = array<i64: 8, 32>}, {pipeline_mode = #tpu.pipeline_mode<synchronous>, transform_indices = @transform_7, window_bounds = array<i64: 8, 32>}]} {
    %c0_i32 = arith.constant 0 : i32
    %0 = arith.cmpi eq, %arg0, %c0_i32 : i32
    %1 = arith.extui %0 : i1 to i32
    %c0_i32_0 = arith.constant 0 : i32
    %2 = arith.cmpi ne, %1, %c0_i32_0 : i32
    scf.if %2 {
      %c0_38 = arith.constant 0 : index
      %c0_39 = arith.constant 0 : index
      %116 = vector.load %arg4[%c0_38, %c0_39] : memref<8x32xf32, #tpu.memory_space<vmem>>, vector<8x32xf32>
      %c0_40 = arith.constant 0 : index
      %c0_41 = arith.constant 0 : index
      %117 = vector.load %arg9[%c0_40, %c0_41] : memref<8x32xf32, #tpu.memory_space<vmem>>, vector<8x32xf32>
      tpu.vector_store %arg9[%c0_40, %c0_41], %116 {strides = array<i32>} : memref<8x32xf32, #tpu.memory_space<vmem>>, vector<8x32xf32>,
      %c0_42 = arith.constant 0 : index
      %c0_43 = arith.constant 0 : index
      %118 = vector.load %arg5[%c0_42, %c0_43] : memref<8x32xf32, #tpu.memory_space<vmem>>, vector<8x32xf32>
      %c0_44 = arith.constant 0 : index
      %c0_45 = arith.constant 0 : index
      %119 = vector.load %arg10[%c0_44, %c0_45] : memref<8x32xf32, #tpu.memory_space<vmem>>, vector<8x32xf32>
      tpu.vector_store %arg10[%c0_44, %c0_45], %118 {strides = array<i32>} : memref<8x32xf32, #tpu.memory_space<vmem>>, vector<8x32xf32>,
    } else {
    }
    %c0 = arith.constant 0 : index
    %c0_1 = arith.constant 0 : index
    %3 = vector.load %arg2[%c0, %c0_1] : memref<8x128xf32, #tpu.memory_space<vmem>>, vector<8x128xf32>
    %c0_2 = arith.constant 0 : index
    %c0_3 = arith.constant 0 : index
    %4 = vector.load %arg3[%c0_2, %c0_3] : memref<128x128xf32, #tpu.memory_space<vmem>>, vector<128x128xf32>
    %c0_4 = arith.constant 0 : index
    %c0_5 = arith.constant 0 : index
    %5 = vector.load %arg9[%c0_4, %c0_5] : memref<8x32xf32, #tpu.memory_space<vmem>>, vector<8x32xf32>
    %c0_6 = arith.constant 0 : index
    %c0_7 = arith.constant 0 : index
    %6 = vector.load %arg10[%c0_6, %c0_7] : memref<8x32xf32, #tpu.memory_space<vmem>>, vector<8x32xf32>
    %c0_i32_8 = arith.constant 0 : i32
    %7 = tpu.concatenate %5, %5, %5, %5 in 1 : vector<8x32xf32>, vector<8x32xf32>, vector<8x32xf32>, vector<8x32xf32> -> vector<8x128xf32>
    %8 = arith.index_cast %c0_i32_8 : i32 to index
    %c0_9 = arith.constant 0 : index
    %c0_10 = arith.constant 0 : index
    %9 = vector.load %arg1[%8, %c0_9, %c0_10] : memref<4x8x128xf32, #tpu.memory_space<vmem>>, vector<1x8x128xf32>
    %10 = vector.shape_cast %9 : vector<1x8x128xf32> to vector<8x128xf32>
    %11 = arith.mulf %7, %3 : vector<8x128xf32>
    %cst = arith.constant dense<0.000000e+00> : vector<8x128xf32>
    %12 = tpu.matmul %11, %4, %cst {dimension_numbers = #tpu.dot_dimension_numbers<[1], [0], [0], [1], [0, 0, 1, 1], [], []>} : vector<8x128xf32>, vector<128x128xf32>, vector<8x128xf32> -> vector<8x128xf32>
    %13 = arith.addf %10, %12 : vector<8x128xf32>
    %14 = arith.negf %13 : vector<8x128xf32>
    %15 = math.exp %14 : vector<8x128xf32>
    %cst_11 = arith.constant 1.000000e+00 : f32
    %16 = vector.broadcast %cst_11 : f32 to vector<8x128xf32>
    %17 = arith.addf %16, %15 : vector<8x128xf32>
    %18 = arith.divf %16, %17 : vector<8x128xf32>
    %19 = math.tanh %13 : vector<8x128xf32>
    %20 = vector.extract_strided_slice %18 {offsets = [0, 0], sizes = [8, 32], strides = [1, 1]} : vector<8x128xf32> to vector<8x32xf32>
    %21 = vector.extract_strided_slice %18 {offsets = [0, 32], sizes = [8, 32], strides = [1, 1]} : vector<8x128xf32> to vector<8x32xf32>
    %22 = vector.extract_strided_slice %18 {offsets = [0, 64], sizes = [8, 32], strides = [1, 1]} : vector<8x128xf32> to vector<8x32xf32>
    %23 = vector.extract_strided_slice %19 {offsets = [0, 96], sizes = [8, 32], strides = [1, 1]} : vector<8x128xf32> to vector<8x32xf32>
    %24 = arith.mulf %21, %6 : vector<8x32xf32>
    %25 = arith.mulf %20, %23 : vector<8x32xf32>
    %26 = arith.addf %24, %25 : vector<8x32xf32>
    %27 = math.tanh %26 : vector<8x32xf32>
    %28 = arith.mulf %22, %27 : vector<8x32xf32>
    %29 = arith.index_cast %c0_i32_8 : i32 to index
    %c0_12 = arith.constant 0 : index
    %c0_13 = arith.constant 0 : index
    %30 = vector.load %arg6[%29, %c0_12, %c0_13] : memref<4x8x32xf32, #tpu.memory_space<vmem>>, vector<1x8x32xf32>
    %31 = vector.shape_cast %30 : vector<1x8x32xf32> to vector<8x32xf32>
    %32 = vector.shape_cast %28 : vector<8x32xf32> to vector<1x8x32xf32>
    tpu.vector_store %arg6[%29, %c0_12, %c0_13], %32 {strides = array<i32>} : memref<4x8x32xf32, #tpu.memory_space<vmem>>, vector<1x8x32xf32>,
    %c1_i32 = arith.constant 1 : i32
    %33 = tpu.concatenate %28, %28, %28, %28 in 1 : vector<8x32xf32>, vector<8x32xf32>, vector<8x32xf32>, vector<8x32xf32> -> vector<8x128xf32>
    %34 = arith.index_cast %c1_i32 : i32 to index
    %c0_14 = arith.constant 0 : index
    %c0_15 = arith.constant 0 : index
    %35 = vector.load %arg1[%34, %c0_14, %c0_15] : memref<4x8x128xf32, #tpu.memory_space<vmem>>, vector<1x8x128xf32>
    %36 = vector.shape_cast %35 : vector<1x8x128xf32> to vector<8x128xf32>
    %37 = arith.mulf %33, %3 : vector<8x128xf32>
    %cst_16 = arith.constant dense<0.000000e+00> : vector<8x128xf32>
    %38 = tpu.matmul %37, %4, %cst_16 {dimension_numbers = #tpu.dot_dimension_numbers<[1], [0], [0], [1], [0, 0, 1, 1], [], []>} : vector<8x128xf32>, vector<128x128xf32>, vector<8x128xf32> -> vector<8x128xf32>
    %39 = arith.addf %36, %38 : vector<8x128xf32>
    %40 = arith.negf %39 : vector<8x128xf32>
    %41 = math.exp %40 : vector<8x128xf32>
    %cst_17 = arith.constant 1.000000e+00 : f32
    %42 = vector.broadcast %cst_17 : f32 to vector<8x128xf32>
    %43 = arith.addf %42, %41 : vector<8x128xf32>
    %44 = arith.divf %42, %43 : vector<8x128xf32>
    %45 = math.tanh %39 : vector<8x128xf32>
    %46 = vector.extract_strided_slice %44 {offsets = [0, 0], sizes = [8, 32], strides = [1, 1]} : vector<8x128xf32> to vector<8x32xf32>
    %47 = vector.extract_strided_slice %44 {offsets = [0, 32], sizes = [8, 32], strides = [1, 1]} : vector<8x128xf32> to vector<8x32xf32>
    %48 = vector.extract_strided_slice %44 {offsets = [0, 64], sizes = [8, 32], strides = [1, 1]} : vector<8x128xf32> to vector<8x32xf32>
    %49 = vector.extract_strided_slice %45 {offsets = [0, 96], sizes = [8, 32], strides = [1, 1]} : vector<8x128xf32> to vector<8x32xf32>
    %50 = arith.mulf %47, %26 : vector<8x32xf32>
    %51 = arith.mulf %46, %49 : vector<8x32xf32>
    %52 = arith.addf %50, %51 : vector<8x32xf32>
    %53 = math.tanh %52 : vector<8x32xf32>
    %54 = arith.mulf %48, %53 : vector<8x32xf32>
    %55 = arith.index_cast %c1_i32 : i32 to index
    %c0_18 = arith.constant 0 : index
    %c0_19 = arith.constant 0 : index
    %56 = vector.load %arg6[%55, %c0_18, %c0_19] : memref<4x8x32xf32, #tpu.memory_space<vmem>>, vector<1x8x32xf32>
    %57 = vector.shape_cast %56 : vector<1x8x32xf32> to vector<8x32xf32>
    %58 = vector.shape_cast %54 : vector<8x32xf32> to vector<1x8x32xf32>
    tpu.vector_store %arg6[%55, %c0_18, %c0_19], %58 {strides = array<i32>} : memref<4x8x32xf32, #tpu.memory_space<vmem>>, vector<1x8x32xf32>,
    %c2_i32 = arith.constant 2 : i32
    %59 = tpu.concatenate %54, %54, %54, %54 in 1 : vector<8x32xf32>, vector<8x32xf32>, vector<8x32xf32>, vector<8x32xf32> -> vector<8x128xf32>
    %60 = arith.index_cast %c2_i32 : i32 to index
    %c0_20 = arith.constant 0 : index
    %c0_21 = arith.constant 0 : index
    %61 = vector.load %arg1[%60, %c0_20, %c0_21] : memref<4x8x128xf32, #tpu.memory_space<vmem>>, vector<1x8x128xf32>
    %62 = vector.shape_cast %61 : vector<1x8x128xf32> to vector<8x128xf32>
    %63 = arith.mulf %59, %3 : vector<8x128xf32>
    %cst_22 = arith.constant dense<0.000000e+00> : vector<8x128xf32>
    %64 = tpu.matmul %63, %4, %cst_22 {dimension_numbers = #tpu.dot_dimension_numbers<[1], [0], [0], [1], [0, 0, 1, 1], [], []>} : vector<8x128xf32>, vector<128x128xf32>, vector<8x128xf32> -> vector<8x128xf32>
    %65 = arith.addf %62, %64 : vector<8x128xf32>
    %66 = arith.negf %65 : vector<8x128xf32>
    %67 = math.exp %66 : vector<8x128xf32>
    %cst_23 = arith.constant 1.000000e+00 : f32
    %68 = vector.broadcast %cst_23 : f32 to vector<8x128xf32>
    %69 = arith.addf %68, %67 : vector<8x128xf32>
    %70 = arith.divf %68, %69 : vector<8x128xf32>
    %71 = math.tanh %65 : vector<8x128xf32>
    %72 = vector.extract_strided_slice %70 {offsets = [0, 0], sizes = [8, 32], strides = [1, 1]} : vector<8x128xf32> to vector<8x32xf32>
    %73 = vector.extract_strided_slice %70 {offsets = [0, 32], sizes = [8, 32], strides = [1, 1]} : vector<8x128xf32> to vector<8x32xf32>
    %74 = vector.extract_strided_slice %70 {offsets = [0, 64], sizes = [8, 32], strides = [1, 1]} : vector<8x128xf32> to vector<8x32xf32>
    %75 = vector.extract_strided_slice %71 {offsets = [0, 96], sizes = [8, 32], strides = [1, 1]} : vector<8x128xf32> to vector<8x32xf32>
    %76 = arith.mulf %73, %52 : vector<8x32xf32>
    %77 = arith.mulf %72, %75 : vector<8x32xf32>
    %78 = arith.addf %76, %77 : vector<8x32xf32>
    %79 = math.tanh %78 : vector<8x32xf32>
    %80 = arith.mulf %74, %79 : vector<8x32xf32>
    %81 = arith.index_cast %c2_i32 : i32 to index
    %c0_24 = arith.constant 0 : index
    %c0_25 = arith.constant 0 : index
    %82 = vector.load %arg6[%81, %c0_24, %c0_25] : memref<4x8x32xf32, #tpu.memory_space<vmem>>, vector<1x8x32xf32>
    %83 = vector.shape_cast %82 : vector<1x8x32xf32> to vector<8x32xf32>
    %84 = vector.shape_cast %80 : vector<8x32xf32> to vector<1x8x32xf32>
    tpu.vector_store %arg6[%81, %c0_24, %c0_25], %84 {strides = array<i32>} : memref<4x8x32xf32, #tpu.memory_space<vmem>>, vector<1x8x32xf32>,
    %c3_i32 = arith.constant 3 : i32
    %85 = tpu.concatenate %80, %80, %80, %80 in 1 : vector<8x32xf32>, vector<8x32xf32>, vector<8x32xf32>, vector<8x32xf32> -> vector<8x128xf32>
    %86 = arith.index_cast %c3_i32 : i32 to index
    %c0_26 = arith.constant 0 : index
    %c0_27 = arith.constant 0 : index
    %87 = vector.load %arg1[%86, %c0_26, %c0_27] : memref<4x8x128xf32, #tpu.memory_space<vmem>>, vector<1x8x128xf32>
    %88 = vector.shape_cast %87 : vector<1x8x128xf32> to vector<8x128xf32>
    %89 = arith.mulf %85, %3 : vector<8x128xf32>
    %cst_28 = arith.constant dense<0.000000e+00> : vector<8x128xf32>
    %90 = tpu.matmul %89, %4, %cst_28 {dimension_numbers = #tpu.dot_dimension_numbers<[1], [0], [0], [1], [0, 0, 1, 1], [], []>} : vector<8x128xf32>, vector<128x128xf32>, vector<8x128xf32> -> vector<8x128xf32>
    %91 = arith.addf %88, %90 : vector<8x128xf32>
    %92 = arith.negf %91 : vector<8x128xf32>
    %93 = math.exp %92 : vector<8x128xf32>
    %cst_29 = arith.constant 1.000000e+00 : f32
    %94 = vector.broadcast %cst_29 : f32 to vector<8x128xf32>
    %95 = arith.addf %94, %93 : vector<8x128xf32>
    %96 = arith.divf %94, %95 : vector<8x128xf32>
    %97 = math.tanh %91 : vector<8x128xf32>
    %98 = vector.extract_strided_slice %96 {offsets = [0, 0], sizes = [8, 32], strides = [1, 1]} : vector<8x128xf32> to vector<8x32xf32>
    %99 = vector.extract_strided_slice %96 {offsets = [0, 32], sizes = [8, 32], strides = [1, 1]} : vector<8x128xf32> to vector<8x32xf32>
    %100 = vector.extract_strided_slice %96 {offsets = [0, 64], sizes = [8, 32], strides = [1, 1]} : vector<8x128xf32> to vector<8x32xf32>
    %101 = vector.extract_strided_slice %97 {offsets = [0, 96], sizes = [8, 32], strides = [1, 1]} : vector<8x128xf32> to vector<8x32xf32>
    %102 = arith.mulf %99, %78 : vector<8x32xf32>
    %103 = arith.mulf %98, %101 : vector<8x32xf32>
    %104 = arith.addf %102, %103 : vector<8x32xf32>
    %105 = math.tanh %104 : vector<8x32xf32>
    %106 = arith.mulf %100, %105 : vector<8x32xf32>
    %107 = arith.index_cast %c3_i32 : i32 to index
    %c0_30 = arith.constant 0 : index
    %c0_31 = arith.constant 0 : index
    %108 = vector.load %arg6[%107, %c0_30, %c0_31] : memref<4x8x32xf32, #tpu.memory_space<vmem>>, vector<1x8x32xf32>
    %109 = vector.shape_cast %108 : vector<1x8x32xf32> to vector<8x32xf32>
    %110 = vector.shape_cast %106 : vector<8x32xf32> to vector<1x8x32xf32>
    tpu.vector_store %arg6[%107, %c0_30, %c0_31], %110 {strides = array<i32>} : memref<4x8x32xf32, #tpu.memory_space<vmem>>, vector<1x8x32xf32>,
    %c4_i32 = arith.constant 4 : i32
    %c0_32 = arith.constant 0 : index
    %c0_33 = arith.constant 0 : index
    %111 = vector.load %arg9[%c0_32, %c0_33] : memref<8x32xf32, #tpu.memory_space<vmem>>, vector<8x32xf32>
    tpu.vector_store %arg9[%c0_32, %c0_33], %106 {strides = array<i32>} : memref<8x32xf32, #tpu.memory_space<vmem>>, vector<8x32xf32>,
    %c0_34 = arith.constant 0 : index
    %c0_35 = arith.constant 0 : index
    %112 = vector.load %arg10[%c0_34, %c0_35] : memref<8x32xf32, #tpu.memory_space<vmem>>, vector<8x32xf32>
    tpu.vector_store %arg10[%c0_34, %c0_35], %104 {strides = array<i32>} : memref<8x32xf32, #tpu.memory_space<vmem>>, vector<8x32xf32>,
    %c1_i32_36 = arith.constant 1 : i32
    %113 = arith.cmpi eq, %arg0, %c1_i32_36 : i32
    %114 = arith.extui %113 : i1 to i32
    %c0_i32_37 = arith.constant 0 : i32
    %115 = arith.cmpi ne, %114, %c0_i32_37 : i32
    scf.if %115 {
      %c0_38 = arith.constant 0 : index
      %c0_39 = arith.constant 0 : index
      %116 = vector.load %arg7[%c0_38, %c0_39] : memref<8x32xf32, #tpu.memory_space<vmem>>, vector<8x32xf32>
      tpu.vector_store %arg7[%c0_38, %c0_39], %106 {strides = array<i32>} : memref<8x32xf32, #tpu.memory_space<vmem>>, vector<8x32xf32>,
      %c0_40 = arith.constant 0 : index
      %c0_41 = arith.constant 0 : index
      %117 = vector.load %arg8[%c0_40, %c0_41] : memref<8x32xf32, #tpu.memory_space<vmem>>, vector<8x32xf32>
      tpu.vector_store %arg8[%c0_40, %c0_41], %104 {strides = array<i32>} : memref<8x32xf32, #tpu.memory_space<vmem>>, vector<8x32xf32>,
    } else {
    }
    return
  }
  func.func @transform_0(%arg0: i32) -> (i32, i32, i32) {
    %c0_i32 = arith.constant 0 : i32
    %c0_i32_0 = arith.constant 0 : i32
    %c0_i32_1 = arith.constant 0 : i32
    return %arg0, %c0_i32, %c0_i32_0 : i32, i32, i32
  }
  func.func @transform_1(%arg0: i32) -> (i32, i32) {
    %c0_i32 = arith.constant 0 : i32
    %c0_i32_0 = arith.constant 0 : i32
    %c0_i32_1 = arith.constant 0 : i32
    return %c0_i32, %c0_i32_0 : i32, i32
  }
  func.func @transform_2(%arg0: i32) -> (i32, i32) {
    %c0_i32 = arith.constant 0 : i32
    %c0_i32_0 = arith.constant 0 : i32
    %c0_i32_1 = arith.constant 0 : i32
    return %c0_i32, %c0_i32_0 : i32, i32
  }
  func.func @transform_3(%arg0: i32) -> (i32, i32) {
    %c0_i32 = arith.constant 0 : i32
    %c0_i32_0 = arith.constant 0 : i32
    %c0_i32_1 = arith.constant 0 : i32
    return %c0_i32, %c0_i32_0 : i32, i32
  }
  func.func @transform_4(%arg0: i32) -> (i32, i32) {
    %c0_i32 = arith.constant 0 : i32
    %c0_i32_0 = arith.constant 0 : i32
    %c0_i32_1 = arith.constant 0 : i32
    return %c0_i32, %c0_i32_0 : i32, i32
  }
  func.func @transform_5(%arg0: i32) -> (i32, i32, i32) {
    %c0_i32 = arith.constant 0 : i32
    %c0_i32_0 = arith.constant 0 : i32
    %c0_i32_1 = arith.constant 0 : i32
    return %arg0, %c0_i32, %c0_i32_0 : i32, i32, i32
  }
  func.func @transform_6(%arg0: i32) -> (i32, i32) {
    %c0_i32 = arith.constant 0 : i32
    %c0_i32_0 = arith.constant 0 : i32
    %c0_i32_1 = arith.constant 0 : i32
    return %c0_i32, %c0_i32_0 : i32, i32
  }
  func.func @transform_7(%arg0: i32) -> (i32, i32) {
    %c0_i32 = arith.constant 0 : i32
    %c0_i32_0 = arith.constant 0 : i32
    %c0_i32_1 = arith.constant 0 : i32
    return %c0_i32, %c0_i32_0 : i32, i32
  }
}

</mosaic_0001>

<bundles_post_ra>
// kernel: stochastic_lstm_cell_forward.1
= control target key start
LH: loop header
LB: loop body
LE: loop exit
PB: predicated region body
PF: predicated region fallthrough
CT: control target
= control target key end

     0   :  { %s815_s24 = smov 0   ;;  %s971_s0 = inlined_call_operand.vmem [shape: f32[8,8,128], index: 0, kind: input, shape index: {}]   ;;  %s972_s1 = inlined_call_operand.vmem [shape: f32[8,128], index: 1, kind: input, shape index: {}]   ;;  %s973_s2 = inlined_call_operand.vmem [shape: f32[128,128], index: 2, kind: input, shape index: {}]   ;;  %s974_s3 = inlined_call_operand.vmem [shape: f32[8,32], index: 3, kind: input, shape index: {}, may-alias: {3,4}]   ;;  %s975_s4 = inlined_call_operand.vmem [shape: f32[8,32], index: 4, kind: input, shape index: {}, may-alias: {3,4}]   ;;  %s976_s5 = inlined_call_operand.vmem [shape: f32[8,8,32], index: 5, kind: output, shape index: {0}]   ;;  %s977_s6 = inlined_call_operand.vmem [shape: f32[8,32], index: 6, kind: output, shape index: {1}]   ;;  %s978_s7 = inlined_call_operand.vmem [shape: f32[8,32], index: 7, kind: output, shape index: {2}]  }
   0x1 LB: > { %s821_s25 = sadd.s32 4294967295, %s770_s24   ;;  %p702_p0 = scmp.ge.s32.totalorder %s770_s24, 1  ;;  %s770_s24 = sphi %s815_s24, %s18_s24  }
   0x2   : > { %p233_p1 = scmp.lt.s32.totalorder %s770_s24, 3 }
   0x4   : > { %p234_p2 = pnand %p702_p0, %p233_p1 }
   0x5   : > { %s703_s26 = sshll.u32 (!%p234_p2), %s821_s25, 2  ;;  %p707_p4 = scmp.ne.s32.totalorder (!%p234_p2), %s821_s25, 0 }
   0x6   : > { %237 = sbr.rel (%p234_p2) target bundleno = 2522 (0x9da), region = 40  ;;  %p266_p3 = scmp.lt.s32.totalorder (!%p234_p2), %s703_s26, 7 }
   0xb   : > { %s980_s26 = smov (!%p266_p3, %s703_s26), 7  ;;  %280 = sbr.rel (%p707_p4) target bundleno = 19 (0x13), region = 44 }
   0xc   : > { %s704_s27 = sshll.u32 %s980_s26, 3 }
   0xd   : > { %s829_s30 = scalar_lea.vmem %s971_s0, %s704_s27  ;;  %s834_s10 = scalar_lea.vmem %s976_s5, %s704_s27 }
  0x10   : > { %v281_v0 = vld [vmem:[%s974_s3] sm:$0xff]  ;;  %vm282_vm0 = vcmask 261120  }
  0x11   : > { %v284_v1 = vld [vmem:[%s975_s4] sm:$0xff]  ;;  %283 = vst.msk [vmem:[#allocation2] sm:$0xff] %vm282_vm0, %v281_v0 }
  0x12   : > { %285 = vst.msk [vmem:[#allocation3] sm:$0xff] %vm282_vm0, %v284_v1 }
  0x13 PF: > { %v302_v3 = vld [vmem:[%s973_s2 + $0x78] sm:$0xff]  ;;  %v301_v4 = vld [vmem:[%s973_s2 + $0x70] sm:$0xff]  ;;  %s772_s19 = smov 32   ;;  %s773_s20 = smov 96   ;;  %v300_v5 = vld [vmem:[%s973_s2 + $0x68] sm:$0xff]  ;;  %vm315_vm1 = vcmask 261120  }
  0x14   : > { %323 = vmatpush.msra.mxu0 %v302_v3  ;;  %402 = vmatpush.msra.mxu1 %v302_v3  ;;  %v299_v6 = vld [vmem:[%s973_s2 + $0x60] sm:$0xff]  ;;  %v298_v7 = vld [vmem:[%s973_s2 + $0x58] sm:$0xff]  ;;  %v297_v8 = vld [vmem:[%s973_s2 + $0x50] sm:$0xff]  ;;  %s774_s9 = smov 64   ;;  %vm317_vm2 = vcmask 523264   ;;  %vm319_vm3 = vcmask 785408  }
  0x15   : > { %478 = vmatpush.msra.mxu2 %v302_v3  ;;  %554 = vmatpush.msra.mxu3 %v302_v3  ;;  %v296_v9 = vld [vmem:[%s973_s2 + $0x48] sm:$0xff]  ;;  %v295_v10 = vld [vmem:[%s973_s2 + $0x40] sm:$0xff]  ;;  %v294_v11 = vld [vmem:[%s973_s2 + $0x38] sm:$0xff]  ;;  %p718_p5 = scmp.ne.s32.totalorder %s821_s25, 1 }
  0x16   : > { %324 = vmatpush.msra.mxu0 %v301_v4  ;;  %403 = vmatpush.msra.mxu1 %v301_v4  ;;  %v293_v12 = vld [vmem:[%s973_s2 + $0x30] sm:$0xff]  ;;  %v292_v13 = vld [vmem:[%s973_s2 + $0x28] sm:$0xff]  ;;  %v291_v14 = vld [vmem:[%s973_s2 + $0x20] sm:$0xff] }
  0x17   : > { %479 = vmatpush.msra.mxu2 %v301_v4  ;;  %555 = vmatpush.msra.mxu3 %v301_v4  ;;  %v290_v15 = vld [vmem:[%s973_s2 + $0x18] sm:$0xff]  ;;  %v289_v16 = vld [vmem:[%s973_s2 + $0x10] sm:$0xff]  ;;  %v288_v17 = vld [vmem:[%s973_s2 + $0x8] sm:$0xff] }
  0x18   : > { %v843_v2 = vld [vmem:[#allocation2] sm:$0xff]  ;;  %325 = vmatpush.msra.mxu0 %v300_v5  ;;  %404 = vmatpush.msra.mxu1 %v300_v5  ;;  %v709_v61 = vld [vmem:[%s829_s30 + $0x8] sm:$0xff] }
  0x19   : > { %306 = vrot.lane.b32.xlu0 %v843_v2, %s772_s19  ;;  %312 = vrot.lane.b32.xlu1 %v843_v2, %s773_s20  ;;  %v287_v18 = vld [vmem:[%s973_s2] sm:$0xff]  ;;  %v304_v19 = vld [vmem:[#allocation3] sm:$0xff] }
  0x1a   : > { %326 = vmatpush.msra.mxu0 %v299_v6  ;;  %480 = vmatpush.msra.mxu2 %v300_v5  ;;  %v905_v24 = vld [vmem:[%s972_s1] sm:$0xff] }
  0x1b   : > { %405 = vmatpush.msra.mxu1 %v299_v6  ;;  %556 = vmatpush.msra.mxu3 %v300_v5  ;;  %v321_v28 = vld [vmem:[%s829_s30] sm:$0xff] }
  0x1c   : > { %327 = vmatpush.msra.mxu0 %v298_v7  ;;  %481 = vmatpush.msra.mxu2 %v299_v6 }
  0x1d   : > { %406 = vmatpush.msra.mxu1 %v298_v7  ;;  %557 = vmatpush.msra.mxu3 %v299_v6 }
  0x1e   : > { %328 = vmatpush.msra.mxu0 %v297_v8  ;;  %482 = vmatpush.msra.mxu2 %v298_v7 }
  0x1f   : > { %407 = vmatpush.msra.mxu1 %v297_v8  ;;  %558 = vmatpush.msra.mxu3 %v298_v7 }
  0x20   : > { %329 = vmatpush.msra.mxu0 %v296_v9  ;;  %483 = vmatpush.msra.mxu2 %v297_v8 }
  0x21   : > { %309 = vrot.lane.b32.xlu0 %v843_v2, %s774_s9  ;;  %408 = vmatpush.msra.mxu1 %v296_v9 }
  0x22   : > { %330 = vmatpush.msra.mxu0 %v295_v10  ;;  %559 = vmatpush.msra.mxu3 %v297_v8 }
  0x23   : > { %409 = vmatpush.msra.mxu1 %v295_v10  ;;  %484 = vmatpush.msra.mxu2 %v296_v9 }
  0x24   : > { %331 = vmatpush.msra.mxu0 %v294_v11  ;;  %560 = vmatpush.msra.mxu3 %v296_v9 }
  0x25   : > { %410 = vmatpush.msra.mxu1 %v294_v11  ;;  %485 = vmatpush.msra.mxu2 %v295_v10 }
  0x26   : > { %561 = vmatpush.msra.mxu3 %v295_v10  ;;  %332 = vmatpush.msra.mxu0 %v293_v12 }
  0x27   : > { %486 = vmatpush.msra.mxu2 %v294_v11  ;;  %411 = vmatpush.msra.mxu1 %v293_v12 }
  0x28   : > { %562 = vmatpush.msra.mxu3 %v294_v11  ;;  %333 = vmatpush.msra.mxu0 %v292_v13 }
  0x29   : > { %487 = vmatpush.msra.mxu2 %v293_v12  ;;  %412 = vmatpush.msra.mxu1 %v292_v13 }
  0x2a   : > { %563 = vmatpush.msra.mxu3 %v293_v12  ;;  %334 = vmatpush.msra.mxu0 %v291_v14 }
  0x2b   : > { %488 = vmatpush.msra.mxu2 %v292_v13  ;;  %413 = vmatpush.msra.mxu1 %v291_v14 }
  0x2c   : > { %564 = vmatpush.msra.mxu3 %v292_v13  ;;  %335 = vmatpush.msra.mxu0 %v290_v15 }
  0x2d   : > { %489 = vmatpush.msra.mxu2 %v291_v14  ;;  %414 = vmatpush.msra.mxu1 %v290_v15 }
  0x2e   : > { %565 = vmatpush.msra.mxu3 %v291_v14  ;;  %336 = vmatpush.msra.mxu0 %v289_v16 }
  0x2f   : > { %490 = vmatpush.msra.mxu2 %v290_v15  ;;  %415 = vmatpush.msra.mxu1 %v289_v16 }
  0x30   : > { %566 = vmatpush.msra.mxu3 %v290_v15  ;;  %337 = vmatpush.msra.mxu0 %v288_v17 }
  0x31   : > { %491 = vmatpush.msra.mxu2 %v289_v16  ;;  %416 = vmatpush.msra.mxu1 %v288_v17 }
  0x32   : > { %567 = vmatpush.msra.mxu3 %v289_v16  ;;  %338 = vmatpush.msra.mxu0 %v287_v18 }
  0x33   : > { %492 = vmatpush.msra.mxu2 %v288_v17  ;;  %417 = vmatpush.msra.mxu1 %v287_v18 }
  0x34   : > { %568 = vmatpush.msra.mxu3 %v288_v17  ;;  %365 = vrot.lane.b32.xlu2 %v304_v19, %s772_s19 }
  0x35   : > { %493 = vmatpush.msra.mxu2 %v287_v18 }
  0x36   : > { %569 = vmatpush.msra.mxu3 %v287_v18 }
  0x8b   : > { %v307_v20 = vpop.permute.xlu0 %306  ;;  %v313_v21 = vpop.permute.xlu1 %312 }
  0x8c   : > { %v316_v22 = vsel %vm315_vm1, %v843_v2, %v307_v20 }
  0x8e   : > { %v366_v47 = vpop.permute.xlu2 %365 }
  0x93   : > { %v310_v23 = vpop.permute.xlu0 %309 }
  0x94   : > { %v318_v25 = vsel %vm317_vm2, %v316_v22, %v310_v23 }
  0x95   : > { %v320_v26 = vsel %vm319_vm3, %v318_v25, %v313_v21 }
  0x96   : > { %v322_v27 = vmul.f32 %v320_v26, %v905_v24 }
  0x98   : > { %339 = vmatmul.f32.vlgmr.msra.gmra.mxu0 %v322_v27 }
 0x115   : > { %v340_v29 = vpop.f32.mrf.mxu0 }
 0x116   : > { %v343_v30 = vadd.f32 %v340_v29, %v321_v28 }
 0x118   : > { %732 = vtanh.f32 %v343_v30  ;;  %v708_v32 = vmul.f32 -1.442695, %v343_v30  ;;  %v712_v30 = vld [vmem:[%s829_s30 + $0x10] sm:$0xff] }
 0x11a   : > { %734 = vpow2.f32 %v708_v32 }
 0x11e   : > { %v733_v31 = vpop.eup %732 }
 0x11f   : > { %370 = vrot.lane.b32.xlu1 %v733_v31, %s772_s19 }
 0x120   : > { %v735_v33 = vpop.eup %734 }
 0x121   : > { %v347_v34 = vadd.f32 1.0, %v735_v33 }
 0x123   : > { %736 = vrcp.f32 %v347_v34  ;;  %v359_v40 = vand.u32 2147483648, %v347_v34  ;;  %vm353_vm5 = vweird.f32 %v347_v34  ;;  %v357_v41 = vand.u32 2147483647, %v347_v34 }
 0x125   : > { %v360_v43 = vor.u32 1.1754944e-38, %v359_v40  ;;  %vm358_vm7 = vcmp.eq.f32.partialorder %v357_v41, 8.507059e+37 }
 0x129   : > { %v737_v35 = vpop.eup %736 }
 0x12a   : > { %v349_v36 = vmul.f32 %v737_v35, %v347_v34  ;;  %vm354_vm4 = vweird.f32 %v737_v35 }
 0x12b   : > { %vm355_vm6 = vmor %vm353_vm5, %vm354_vm4 }
 0x12c   : > { %v350_v37 = vsub.f32 1.0, %v349_v36 }
 0x12e   : > { %v351_v38 = vmul.f32 %v737_v35, %v350_v37 }
 0x130   : > { %v352_v39 = vadd.f32 %v737_v35, %v351_v38 }
 0x132   : > { %v356_v42 = vsel %vm355_vm6, %v737_v35, %v352_v39 }
 0x133   : > { %v361_v44 = vsel %vm358_vm7, %v360_v43, %v356_v42 }
 0x134   : > { %v368_v48 = vmul.f32 %v366_v47, %v361_v44 }
 0x191   : > { %v371_v45 = vpop.permute.xlu1 %370 }
 0x192   : > { %v373_v46 = vmul.f32 %v371_v45, %v361_v44 }
 0x194   : > { %375 = vrot.lane.b32.xlu2 %v373_v46, %s772_s19 }
 0x1ee   : > { %v376_v49 = vpop.permute.xlu2 %375 }
 0x1ef   : > { %v378_v50 = vadd.f32 %v376_v49, %v368_v48 }
 0x1f1   : > { %738 = vtanh.f32 %v378_v50 }
 0x1f7   : > { %v739_v51 = vpop.eup %738 }
 0x1f8   : > { %381 = vrot.lane.b32.xlu0 %v739_v51, %s772_s19 }
 0x26a   : > { %v382_v52 = vpop.permute.xlu0 %381 }
 0x26b   : > { %v384_v53 = vmul.f32 %v382_v52, %v361_v44 }
 0x26d   : > { %393 = vrot.lane.b32.xlu0 %v384_v53, %s772_s19  ;;  %390 = vrot.lane.b32.xlu2 %v384_v53, %s773_s20 }
 0x26e   : > { %386 = vrot.lane.b32.xlu1 %v384_v53, %s774_s9 }
 0x2c7   : > { %v391_v54 = vpop.permute.xlu2 %390 }
 0x2df   : > { %v394_v57 = vpop.permute.xlu0 %393 }
 0x2e0   : > { %v387_v55 = vpop.permute.xlu1 %386 }
 0x2e1   : > { %389 = vst.msk [vmem:[%s834_s10] sm:$0xff] %vm315_vm1, %v387_v55  ;;  %v396_v56 = vsel %vm315_vm1, %v387_v55, %v391_v54 }
 0x2e2   : > { %v397_v58 = vsel %vm317_vm2, %v396_v56, %v384_v53 }
 0x2e3   : > { %v398_v59 = vsel %vm319_vm3, %v397_v58, %v394_v57 }
 0x2e4   : > { %v401_v60 = vmul.f32 %v398_v59, %v905_v24 }
 0x2e6   : > { %418 = vmatmul.f32.vlgmr.msra.gmra.mxu1 %v401_v60 }
 0x363   : > { %v419_v62 = vpop.f32.mrf.mxu1 }
 0x364   : > { %v422_v63 = vadd.f32 %v709_v61, %v419_v62  ;;  %v715_v62 = vld [vmem:[%s829_s30 + $0x18] sm:$0xff] }
 0x366   : > { %740 = vtanh.f32 %v422_v63  ;;  %v710_v1 = vmul.f32 -1.442695, %v422_v63 }
 0x368   : > { %742 = vpow2.f32 %v710_v1 }
 0x36c   : > { %v741_v0 = vpop.eup %740 }
 0x36d   : > { %445 = vrot.lane.b32.xlu1 %v741_v0, %s772_s19 }
 0x36e   : > { %v743_v2 = vpop.eup %742 }
 0x36f   : > { %v426_v3 = vadd.f32 1.0, %v743_v2 }
 0x371   : > { %744 = vrcp.f32 %v426_v3  ;;  %v438_v9 = vand.u32 2147483648, %v426_v3  ;;  %vm432_vm9 = vweird.f32 %v426_v3  ;;  %v436_v10 = vand.u32 2147483647, %v426_v3 }
 0x373   : > { %v439_v12 = vor.u32 1.1754944e-38, %v438_v9  ;;  %vm437_vm11 = vcmp.eq.f32.partialorder %v436_v10, 8.507059e+37 }
 0x377   : > { %v745_v4 = vpop.eup %744 }
 0x378   : > { %v428_v5 = vmul.f32 %v745_v4, %v426_v3  ;;  %vm433_vm8 = vweird.f32 %v745_v4 }
 0x379   : > { %vm434_vm10 = vmor %vm432_vm9, %vm433_vm8 }
 0x37a   : > { %v429_v6 = vsub.f32 1.0, %v428_v5 }
 0x37c   : > { %v430_v7 = vmul.f32 %v745_v4, %v429_v6 }
 0x37e   : > { %v431_v8 = vadd.f32 %v745_v4, %v430_v7 }
 0x380   : > { %v435_v11 = vsel %vm434_vm10, %v745_v4, %v431_v8 }
 0x381   : > { %v440_v14 = vsel %vm437_vm11, %v439_v12, %v435_v11 }
 0x382   : > { %v443_v16 = vmul.f32 %v440_v14, %v378_v50 }
 0x3df   : > { %v446_v13 = vpop.permute.xlu1 %445 }
 0x3e0   : > { %v448_v15 = vmul.f32 %v446_v13, %v440_v14 }
 0x3e2   : > { %450 = vrot.lane.b32.xlu2 %v448_v15, %s772_s19 }
 0x43c   : > { %v451_v17 = vpop.permute.xlu2 %450 }
 0x43d   : > { %v453_v18 = vadd.f32 %v451_v17, %v443_v16 }
 0x43f   : > { %746 = vtanh.f32 %v453_v18 }
 0x445   : > { %v747_v19 = vpop.eup %746 }
 0x446   : > { %456 = vrot.lane.b32.xlu0 %v747_v19, %s772_s19 }
 0x4b8   : > { %v457_v20 = vpop.permute.xlu0 %456 }
 0x4b9   : > { %v459_v21 = vmul.f32 %v457_v20, %v440_v14 }
 0x4bb   : > { %469 = vrot.lane.b32.xlu0 %v459_v21, %s772_s19  ;;  %466 = vrot.lane.b32.xlu2 %v459_v21, %s773_s20 }
 0x4bc   : > { %461 = vrot.lane.b32.xlu1 %v459_v21, %s774_s9 }
 0x515   : > { %v467_v22 = vpop.permute.xlu2 %466 }
 0x52d   : > { %v470_v26 = vpop.permute.xlu0 %469 }
 0x52e   : > { %v462_v23 = vpop.permute.xlu1 %461 }
 0x52f   : > { %711 = vst.msk [vmem:[%s834_s10 + $0x8] sm:$0xff] %vm315_vm1, %v462_v23  ;;  %v472_v25 = vsel %vm315_vm1, %v462_v23, %v467_v22 }
 0x530   : > { %v473_v27 = vsel %vm317_vm2, %v472_v25, %v459_v21 }
 0x531   : > { %v474_v28 = vsel %vm319_vm3, %v473_v27, %v470_v26 }
 0x532   : > { %v477_v29 = vmul.f32 %v474_v28, %v905_v24 }
 0x534   : > { %494 = vmatmul.f32.vlgmr.msra.gmra.mxu2 %v477_v29 }
 0x5b7   : > { %v495_v31 = vpop.f32.mrf.mxu2 }
 0x5b8   : > { %v498_v32 = vadd.f32 %v712_v30, %v495_v31 }
 0x5ba   : > { %748 = vtanh.f32 %v498_v32  ;;  %v713_v34 = vmul.f32 -1.442695, %v498_v32 }
 0x5bc   : > { %750 = vpow2.f32 %v713_v34 }
 0x5c0   : > { %v749_v33 = vpop.eup %748 }
 0x5c1   : > { %521 = vrot.lane.b32.xlu1 %v749_v33, %s772_s19 }
 0x5c2   : > { %v751_v35 = vpop.eup %750 }
 0x5c3   : > { %v502_v36 = vadd.f32 1.0, %v751_v35 }
 0x5c5   : > { %752 = vrcp.f32 %v502_v36  ;;  %v514_v42 = vand.u32 2147483648, %v502_v36  ;;  %vm508_vm13 = vweird.f32 %v502_v36  ;;  %v512_v43 = vand.u32 2147483647, %v502_v36 }
 0x5c7   : > { %v515_v45 = vor.u32 1.1754944e-38, %v514_v42  ;;  %vm513_vm15 = vcmp.eq.f32.partialorder %v512_v43, 8.507059e+37 }
 0x5cb   : > { %v753_v37 = vpop.eup %752 }
 0x5cc   : > { %v504_v38 = vmul.f32 %v753_v37, %v502_v36  ;;  %vm509_vm12 = vweird.f32 %v753_v37 }
 0x5cd   : > { %vm510_vm14 = vmor %vm508_vm13, %vm509_vm12 }
 0x5ce   : > { %v505_v39 = vsub.f32 1.0, %v504_v38 }
 0x5d0   : > { %v506_v40 = vmul.f32 %v753_v37, %v505_v39 }
 0x5d2   : > { %v507_v41 = vadd.f32 %v753_v37, %v506_v40 }
 0x5d4   : > { %v511_v44 = vsel %vm510_vm14, %v753_v37, %v507_v41 }
 0x5d5   : > { %v516_v47 = vsel %vm513_vm15, %v515_v45, %v511_v44 }
 0x5d6   : > { %v519_v49 = vmul.f32 %v516_v47, %v453_v18 }
 0x633   : > { %v522_v46 = vpop.permute.xlu1 %521 }
 0x634   : > { %v524_v48 = vmul.f32 %v522_v46, %v516_v47 }
 0x636   : > { %526 = vrot.lane.b32.xlu2 %v524_v48, %s772_s19 }
 0x690   : > { %v527_v50 = vpop.permute.xlu2 %526 }
 0x691   : > { %v529_v51 = vadd.f32 %v527_v50, %v519_v49 }
 0x693   : > { %754 = vtanh.f32 %v529_v51 }
 0x699   : > { %v755_v52 = vpop.eup %754 }
 0x69a   : > { %532 = vrot.lane.b32.xlu0 %v755_v52, %s772_s19 }
 0x70c   : > { %v533_v53 = vpop.permute.xlu0 %532 }
 0x70d   : > { %v535_v54 = vmul.f32 %v533_v53, %v516_v47 }
 0x70f   : > { %545 = vrot.lane.b32.xlu0 %v535_v54, %s772_s19  ;;  %542 = vrot.lane.b32.xlu2 %v535_v54, %s773_s20 }
 0x710   : > { %537 = vrot.lane.b32.xlu1 %v535_v54, %s774_s9 }
 0x769   : > { %v543_v55 = vpop.permute.xlu2 %542 }
 0x781   : > { %v546_v58 = vpop.permute.xlu0 %545 }
 0x782   : > { %v538_v56 = vpop.permute.xlu1 %537 }
 0x783   : > { %714 = vst.msk [vmem:[%s834_s10 + $0x10] sm:$0xff] %vm315_vm1, %v538_v56  ;;  %v548_v57 = vsel %vm315_vm1, %v538_v56, %v543_v55 }
 0x784   : > { %v549_v59 = vsel %vm317_vm2, %v548_v57, %v535_v54 }
 0x785   : > { %v550_v60 = vsel %vm319_vm3, %v549_v59, %v546_v58 }
 0x786   : > { %v553_v61 = vmul.f32 %v550_v60, %v905_v24 }
 0x788   : > { %570 = vmatmul.f32.vlgmr.msra.gmra.mxu3 %v553_v61 }
 0x80b   : > { %v571_v63 = vpop.f32.mrf.mxu3 }
 0x80c   : > { %v574_v0 = vadd.f32 %v715_v62, %v571_v63 }
 0x80e   : > { %756 = vtanh.f32 %v574_v0  ;;  %v716_v2 = vmul.f32 -1.442695, %v574_v0 }
 0x810   : > { %758 = vpow2.f32 %v716_v2 }
 0x814   : > { %v757_v1 = vpop.eup %756 }
 0x815   : > { %597 = vrot.lane.b32.xlu1 %v757_v1, %s772_s19 }
 0x816   : > { %v759_v3 = vpop.eup %758 }
 0x817   : > { %v578_v4 = vadd.f32 1.0, %v759_v3 }
 0x819   : > { %760 = vrcp.f32 %v578_v4  ;;  %v590_v24 = vand.u32 2147483648, %v578_v4  ;;  %vm584_vm2 = vweird.f32 %v578_v4  ;;  %v588_v10 = vand.u32 2147483647, %v578_v4 }
 0x81b   : > { %v591_v12 = vor.u32 1.1754944e-38, %v590_v24  ;;  %vm589_vm4 = vcmp.eq.f32.partialorder %v588_v10, 8.507059e+37 }
 0x81f   : > { %v761_v5 = vpop.eup %760 }
 0x820   : > { %v580_v6 = vmul.f32 %v761_v5, %v578_v4  ;;  %vm585_vm0 = vweird.f32 %v761_v5 }
 0x821   : > { %vm586_vm3 = vmor %vm584_vm2, %vm585_vm0 }
 0x822   : > { %v581_v7 = vsub.f32 1.0, %v580_v6 }
 0x824   : > { %v582_v8 = vmul.f32 %v761_v5, %v581_v7 }
 0x826   : > { %v583_v9 = vadd.f32 %v761_v5, %v582_v8 }
 0x828   : > { %v587_v11 = vsel %vm586_vm3, %v761_v5, %v583_v9 }
 0x829   : > { %v592_v14 = vsel %vm589_vm4, %v591_v12, %v587_v11 }
 0x82a   : > { %v595_v16 = vmul.f32 %v592_v14, %v529_v51 }
 0x887   : > { %v598_v13 = vpop.permute.xlu1 %597 }
 0x888   : > { %v600_v15 = vmul.f32 %v598_v13, %v592_v14 }
 0x88a   : > { %602 = vrot.lane.b32.xlu2 %v600_v15, %s772_s19 }
 0x8e4   : > { %v603_v17 = vpop.permute.xlu2 %602 }
 0x8e5   : > { %v605_v18 = vadd.f32 %v603_v17, %v595_v16 }
 0x8e7   : > { %762 = vtanh.f32 %v605_v18  ;;  %620 = vrot.lane.b32.xlu2 %v605_v18, %s773_s20 }
 0x8ed   : > { %v763_v19 = vpop.eup %762 }
 0x8ee   : > { %608 = vrot.lane.b32.xlu0 %v763_v19, %s772_s19 }
 0x941   : > { %v621_v20 = vpop.permute.xlu2 %620 }
 0x942   : > { %623 = vst.msk [vmem:[#allocation3] sm:$0xff] %vm315_vm1, %v621_v20 }
 0x960   : > { %v609_v21 = vpop.permute.xlu0 %608 }
 0x961   : > { %v611_v22 = vmul.f32 %v609_v21, %v592_v14 }
 0x963   : > { %613 = vrot.lane.b32.xlu1 %v611_v22, %s774_s9 }
 0x9d3   : > { %627 = sbr.rel (%p718_p5) target bundleno = 2522 (0x9da), region = 48 }
 0x9d5   : > { %v614_v23 = vpop.permute.xlu1 %613 }
 0x9d6   : > { %717 = vst.msk [vmem:[%s834_s10 + $0x18] sm:$0xff] %vm315_vm1, %v614_v23 }
 0x9d7   : > { %618 = vst.msk [vmem:[#allocation2] sm:$0xff] %vm315_vm1, %v614_v23 }
 0x9d8   : > { %628 = vst.msk [vmem:[%s977_s6] sm:$0xff] %vm315_vm1, %v614_v23 }
 0x9d9   : > { %629 = vst.msk [vmem:[%s978_s7] sm:$0xff] %vm315_vm1, %v621_v20 }
 0x9da PF: > { %s18_s24 = sadd.s32 1, %s770_s24  }
 0x9db   : > { %p15_p6 = scmp.ge.s32.totalorder %s18_s24, 4  }
 0x9dd   :  { %17 = sbr.rel (!%p15_p6) target bundleno = 1 (0x1), region = 100 }

</bundles_post_ra>
